<compile_context>
chip_gen: v7x
topology: tpu7x:2x2x1
jax: 0.10.0
libtpu: 0.0.40
codegen_flags: <defaults>
</compile_context>

<pallas_src>
import jax
import jax.numpy as jnp
from jax.experimental import pallas as pl
from jax.experimental.pallas import tpu as pltpu


# ----------------------------------------------------------------------------
# Pallas kernel: fused PromptCrossA head, all batches in one grid step.
#   v_ref    : (B, P, Cp)       visual tokens (channels-last), P = H*W
#   te_ref   : (B, K, Cp)       text embeddings
#   td_ref   : (B, K, Cp)       text diff from the context decoder
#   gamma_ref: (1, Cp)          learnable per-channel scale
#   wup_ref  : (P, Ho*Wo)  f32  fused x4 bilinear weight (kron of Mh, Mw)
#   out_ref  : (B, K, Ho*Wo)    upsampled score map, flattened spatially
# ----------------------------------------------------------------------------
def prompt_cross_head_kernel(v_ref, te_ref, td_ref, gamma_ref, wup_ref,
                             out_ref):
    B = v_ref.shape[0]

    gamma = gamma_ref[...]                        # (1, Cp), hoisted
    wup = wup_ref[...]                            # (P, Ho*Wo), hoisted

    for b in range(B):                            # B folded; static unrolled
        v = v_ref[b]                              # (P, Cp) f32
        t = te_ref[b] + gamma * td_ref[b]         # (K, Cp) f32

        # F.normalize(..., p=2, eps=1e-12) over channels via rsqrt (EUP path).
        # max(||x||, 1e-12) == sqrt(max(sum x^2, 1e-24))  (sqrt is monotone);
        # zero-padded channels contribute 0, so Cp-padding is exact.
        t_n = t * jax.lax.rsqrt(
            jnp.maximum(jnp.sum(t * t, axis=-1, keepdims=True), 1e-24))
        v_n = v * jax.lax.rsqrt(
            jnp.maximum(jnp.sum(v * v, axis=-1, keepdims=True), 1e-24))

        # score[k, p] = sum_c t_n[k, c] * v_n[p, c]
        # (== einsum('bchw,bkc->bkhw') with p = h*W + w).  Computed directly
        # in (K, P): classes on sublanes, spatial on lanes — no transpose.
        s = jax.lax.dot_general(
            t_n, v_n, (((1,), (1,)), ((), ())),
            preferred_element_type=jnp.float32)   # (K, P)

        # Fused separable bilinear x4 (H and W axes together) as one matmul:
        # out[k, ho*Wo+wo] = sum_{h,w} Mh[ho,h] * score[k,h,w] * Mw[wo,w].
        # Result is lane-dense (Ho*Wo = 1024 lanes) -> single unmasked store.
        out_ref[b] = jnp.dot(s, wup, preferred_element_type=jnp.float32)


def _bilinear_matrix(n_in: int, scale: int) -> jnp.ndarray:
    """1-D bilinear interpolation matrix (PyTorch align_corners=False).

    Matches torch.nn.functional.interpolate(mode='bilinear',
    align_corners=False): src = (i+0.5)/scale - 0.5 clamped at 0, with the
    upper neighbour clamped to n_in-1.
    """
    n_out = n_in * scale
    i = jnp.arange(n_out, dtype=jnp.float32)
    src = jnp.maximum((i + 0.5) / scale - 0.5, 0.0)
    i0 = jnp.minimum(jnp.floor(src).astype(jnp.int32), n_in - 1)
    i1 = jnp.minimum(i0 + 1, n_in - 1)
    w1 = src - i0.astype(jnp.float32)
    w0 = 1.0 - w1
    oh0 = jax.nn.one_hot(i0, n_in, dtype=jnp.float32)
    oh1 = jax.nn.one_hot(i1, n_in, dtype=jnp.float32)
    return w0[:, None] * oh0 + w1[:, None] * oh1       # (n_out, n_in)


def prompt_cross_head(v, text_emb, text_diff, gamma, H, W, scale=4):
    """v: (B, P, C) with P=H*W;  text_emb/text_diff: (B, K, C); gamma: (C,)."""
    B, P, C = v.shape
    _, K, _ = text_emb.shape
    assert P == H * W
    Ho, Wo = H * scale, W * scale
    Q = Ho * Wo

    # Zero-pad C up to a multiple of 128 (lane-dense contraction; exact for
    # the L2 norms and the dot since the pad contributes zeros).
    Cp = ((C + 127) // 128) * 128
    if Cp != C:
        pad3 = ((0, 0), (0, 0), (0, Cp - C))
        v = jnp.pad(v, pad3)
        text_emb = jnp.pad(text_emb, pad3)
        text_diff = jnp.pad(text_diff, pad3)
        gamma = jnp.pad(gamma, (0, Cp - C))
    gamma2d = gamma.reshape(1, Cp)

    # Fused x4 bilinear weight: Wup[h*W+w, ho*Wo+wo] = Mh[ho,h] * Mw[wo,w].
    mh = _bilinear_matrix(H, scale)                     # (Ho, H)
    mw = _bilinear_matrix(W, scale)                     # (Wo, W)
    wup = jnp.einsum('oh,pw->hwop', mh, mw).reshape(P, Q)   # (P, Ho*Wo) f32

    out_flat = pl.pallas_call(
        prompt_cross_head_kernel,
        out_shape=jax.ShapeDtypeStruct((B, K, Q), jnp.float32),
        grid_spec=pltpu.PrefetchScalarGridSpec(
            num_scalar_prefetch=0,
            grid=(1,),                      # B folded (single-TC friendly);
            in_specs=[                      # on v7x use grid=(B,), "parallel"
                pl.BlockSpec((B, P, Cp), lambda i: (0, 0, 0)),
                pl.BlockSpec((B, K, Cp), lambda i: (0, 0, 0)),
                pl.BlockSpec((B, K, Cp), lambda i: (0, 0, 0)),
                pl.BlockSpec((1, Cp), lambda i: (0, 0)),
                pl.BlockSpec((P, Q), lambda i: (0, 0)),
            ],
            out_specs=pl.BlockSpec((B, K, Q), lambda i: (0, 0, 0)),
        ),
        compiler_params=pltpu.CompilerParams(
            dimension_semantics=("arbitrary",)),
    )(v, text_emb, text_diff, gamma2d, wup)

    # Free row-major reshape back to the PyTorch output layout.
    return out_flat.reshape(B, K, Ho, Wo)               # (B, K, 4H, 4W)


def _reference_head(v, text_emb, text_diff, gamma, H, W, scale=4):
    """Pure-JAX f32 reference of the same forward semantics (verification)."""
    B, P, C = v.shape
    t = text_emb + gamma * text_diff
    v_img = jnp.transpose(v.reshape(B, H, W, C), (0, 3, 1, 2))        # b c h w
    v_n = v_img / jnp.maximum(
        jnp.sqrt(jnp.sum(v_img * v_img, axis=1, keepdims=True)), 1e-12)
    t_n = t / jnp.maximum(
        jnp.sqrt(jnp.sum(t * t, axis=2, keepdims=True)), 1e-12)
    score = jnp.einsum('bchw,bkc->bkhw', v_n, t_n,
                       precision=jax.lax.Precision.HIGHEST)
    Mh = _bilinear_matrix(H, scale)
    Mw = _bilinear_matrix(W, scale)
    return jnp.einsum('Hh,bkhw,Ww->bkHW', Mh, score, Mw,
                      precision=jax.lax.Precision.HIGHEST)


if __name__ == "__main__":
    # TODO(synk): CLIP text encoder, Swin vision encoder, ContextDecoder and
    # HierarchicalCrossA are large pretrained submodules with no clean Pallas
    # equivalent here; their outputs are synthesized as inputs below.
    B, H, W, C, K = 2, 8, 8, 32, 5      # small shapes; P = H*W = 64
    P = H * W

    key = jax.random.PRNGKey(0)
    k1, k2, k3 = jax.random.split(key, 3)
    v = jax.random.normal(k1, (B, P, C), dtype=jnp.float32)          # vision_decoder out
    text_emb = jax.random.normal(k2, (B, K, C), dtype=jnp.float32)   # text_encoder out
    text_diff = jax.random.normal(k3, (B, K, C), dtype=jnp.float32)  # context_decoder out
    gamma = jnp.full((C,), 1e-4, dtype=jnp.float32)                  # nn.Parameter init

    out = prompt_cross_head(v, text_emb, text_diff, gamma, H, W)
    out = jax.block_until_ready(out)

    ref = _reference_head(v, text_emb, text_diff, gamma, H, W)
    assert out.shape == (B, K, 4 * H, 4 * W), out.shape
    # All-f32 datapath now; tolerance is kept with margin for MXU f32
    # accumulation-order differences (tighter than revision 2's bf16 2e-2).
    assert jnp.allclose(out, ref, atol=1e-2, rtol=1e-2), "mismatch vs reference"

    print("KERNEL_OK")
</pallas_src>

<mosaic_0001>
module attributes {stable_mosaic.version = 11 : i64} {
  func.func @prompt_cross_head_kernel(%arg0: i32, %arg1: memref<2x64x128xf32, #tpu.memory_space<vmem>>, %arg2: memref<2x5x128xf32, #tpu.memory_space<vmem>>, %arg3: memref<2x5x128xf32, #tpu.memory_space<vmem>>, %arg4: memref<1x128xf32, #tpu.memory_space<vmem>>, %arg5: memref<64x1024xf32, #tpu.memory_space<vmem>>, %arg6: memref<2x5x1024xf32, #tpu.memory_space<vmem>>) attributes {dimension_semantics = [#tpu.dimension_semantics<arbitrary>], iteration_bounds = array<i64: 1>, scalar_prefetch = 0 : i64, scratch_operands = 0 : i64, tpu.core_type = #tpu.core_type<tc>, window_params = [{pipeline_mode = #tpu.pipeline_mode<synchronous>, transform_indices = @transform_0, window_bounds = array<i64: 2, 64, 128>}, {pipeline_mode = #tpu.pipeline_mode<synchronous>, transform_indices = @transform_1, window_bounds = array<i64: 2, 5, 128>}, {pipeline_mode = #tpu.pipeline_mode<synchronous>, transform_indices = @transform_2, window_bounds = array<i64: 2, 5, 128>}, {pipeline_mode = #tpu.pipeline_mode<synchronous>, transform_indices = @transform_3, window_bounds = array<i64: 1, 128>}, {pipeline_mode = #tpu.pipeline_mode<synchronous>, transform_indices = @transform_4, window_bounds = array<i64: 64, 1024>}, {pipeline_mode = #tpu.pipeline_mode<synchronous>, transform_indices = @transform_5, window_bounds = array<i64: 2, 5, 1024>}]} {
    %c0 = arith.constant 0 : index
    %c0_0 = arith.constant 0 : index
    %0 = vector.load %arg4[%c0, %c0_0] : memref<1x128xf32, #tpu.memory_space<vmem>>, vector<1x128xf32>
    %c0_1 = arith.constant 0 : index
    %c0_2 = arith.constant 0 : index
    %1 = vector.load %arg5[%c0_1, %c0_2] : memref<64x1024xf32, #tpu.memory_space<vmem>>, vector<64x1024xf32>
    %c0_3 = arith.constant 0 : index
    %c0_4 = arith.constant 0 : index
    %c0_5 = arith.constant 0 : index
    %2 = vector.load %arg1[%c0_3, %c0_4, %c0_5] : memref<2x64x128xf32, #tpu.memory_space<vmem>>, vector<1x64x128xf32>
    %3 = vector.shape_cast %2 : vector<1x64x128xf32> to vector<64x128xf32>
    %c0_6 = arith.constant 0 : index
    %c0_7 = arith.constant 0 : index
    %c0_8 = arith.constant 0 : index
    %4 = vector.load %arg2[%c0_6, %c0_7, %c0_8] : memref<2x5x128xf32, #tpu.memory_space<vmem>>, vector<1x5x128xf32>
    %5 = vector.shape_cast %4 : vector<1x5x128xf32> to vector<5x128xf32>
    %c0_9 = arith.constant 0 : index
    %c0_10 = arith.constant 0 : index
    %c0_11 = arith.constant 0 : index
    %6 = vector.load %arg3[%c0_9, %c0_10, %c0_11] : memref<2x5x128xf32, #tpu.memory_space<vmem>>, vector<1x5x128xf32>
    %7 = vector.shape_cast %6 : vector<1x5x128xf32> to vector<5x128xf32>
    %8 = vector.broadcast %0 : vector<1x128xf32> to vector<5x128xf32>
    %9 = arith.mulf %8, %7 : vector<5x128xf32>
    %10 = arith.addf %5, %9 : vector<5x128xf32>
    %11 = arith.mulf %10, %10 : vector<5x128xf32>
    %cst = arith.constant dense<0.000000e+00> : vector<5xf32>
    %12 = vector.multi_reduction <add>, %11, %cst [1] : vector<5x128xf32> to vector<5xf32>
    %13 = vector.shape_cast %12 : vector<5xf32> to vector<5x1xf32>
    %cst_12 = arith.constant 1.000000e-24 : f32
    %14 = vector.broadcast %cst_12 : f32 to vector<5x1xf32>
    %15 = arith.maximumf %13, %14 : vector<5x1xf32>
    %16 = math.rsqrt %15 : vector<5x1xf32>
    %17 = vector.broadcast %16 : vector<5x1xf32> to vector<5x128xf32>
    %18 = arith.mulf %10, %17 : vector<5x128xf32>
    %19 = arith.mulf %3, %3 : vector<64x128xf32>
    %cst_13 = arith.constant dense<0.000000e+00> : vector<64xf32>
    %20 = vector.multi_reduction <add>, %19, %cst_13 [1] : vector<64x128xf32> to vector<64xf32>
    %21 = vector.shape_cast %20 : vector<64xf32> to vector<64x1xf32>
    %cst_14 = arith.constant 1.000000e-24 : f32
    %22 = vector.broadcast %cst_14 : f32 to vector<64x1xf32>
    %23 = arith.maximumf %21, %22 : vector<64x1xf32>
    %24 = math.rsqrt %23 : vector<64x1xf32>
    %25 = vector.broadcast %24 : vector<64x1xf32> to vector<64x128xf32>
    %26 = arith.mulf %3, %25 : vector<64x128xf32>
    %cst_15 = arith.constant dense<0.000000e+00> : vector<5x64xf32>
    %27 = tpu.matmul %18, %26, %cst_15 {dimension_numbers = #tpu.dot_dimension_numbers<[1], [1], [0], [0], [0, 0, 1, 0], [], []>} : vector<5x128xf32>, vector<64x128xf32>, vector<5x64xf32> -> vector<5x64xf32>
    %cst_16 = arith.constant dense<0.000000e+00> : vector<5x1024xf32>
    %28 = tpu.matmul %27, %1, %cst_16 {dimension_numbers = #tpu.dot_dimension_numbers<[1], [0], [0], [1], [0, 0, 1, 1], [], []>} : vector<5x64xf32>, vector<64x1024xf32>, vector<5x1024xf32> -> vector<5x1024xf32>
    %c0_17 = arith.constant 0 : index
    %c0_18 = arith.constant 0 : index
    %c0_19 = arith.constant 0 : index
    %29 = vector.load %arg6[%c0_17, %c0_18, %c0_19] : memref<2x5x1024xf32, #tpu.memory_space<vmem>>, vector<1x5x1024xf32>
    %30 = vector.shape_cast %29 : vector<1x5x1024xf32> to vector<5x1024xf32>
    %31 = vector.shape_cast %28 : vector<5x1024xf32> to vector<1x5x1024xf32>
    tpu.vector_store %arg6[%c0_17, %c0_18, %c0_19], %31 {strides = array<i32>} : memref<2x5x1024xf32, #tpu.memory_space<vmem>>, vector<1x5x1024xf32>,
    %c1 = arith.constant 1 : index
    %c0_20 = arith.constant 0 : index
    %c0_21 = arith.constant 0 : index
    %32 = vector.load %arg1[%c1, %c0_20, %c0_21] : memref<2x64x128xf32, #tpu.memory_space<vmem>>, vector<1x64x128xf32>
    %33 = vector.shape_cast %32 : vector<1x64x128xf32> to vector<64x128xf32>
    %c1_22 = arith.constant 1 : index
    %c0_23 = arith.constant 0 : index
    %c0_24 = arith.constant 0 : index
    %34 = vector.load %arg2[%c1_22, %c0_23, %c0_24] : memref<2x5x128xf32, #tpu.memory_space<vmem>>, vector<1x5x128xf32>
    %35 = vector.shape_cast %34 : vector<1x5x128xf32> to vector<5x128xf32>
    %c1_25 = arith.constant 1 : index
    %c0_26 = arith.constant 0 : index
    %c0_27 = arith.constant 0 : index
    %36 = vector.load %arg3[%c1_25, %c0_26, %c0_27] : memref<2x5x128xf32, #tpu.memory_space<vmem>>, vector<1x5x128xf32>
    %37 = vector.shape_cast %36 : vector<1x5x128xf32> to vector<5x128xf32>
    %38 = vector.broadcast %0 : vector<1x128xf32> to vector<5x128xf32>
    %39 = arith.mulf %38, %37 : vector<5x128xf32>
    %40 = arith.addf %35, %39 : vector<5x128xf32>
    %41 = arith.mulf %40, %40 : vector<5x128xf32>
    %cst_28 = arith.constant dense<0.000000e+00> : vector<5xf32>
    %42 = vector.multi_reduction <add>, %41, %cst_28 [1] : vector<5x128xf32> to vector<5xf32>
    %43 = vector.shape_cast %42 : vector<5xf32> to vector<5x1xf32>
    %cst_29 = arith.constant 1.000000e-24 : f32
    %44 = vector.broadcast %cst_29 : f32 to vector<5x1xf32>
    %45 = arith.maximumf %43, %44 : vector<5x1xf32>
    %46 = math.rsqrt %45 : vector<5x1xf32>
    %47 = vector.broadcast %46 : vector<5x1xf32> to vector<5x128xf32>
    %48 = arith.mulf %40, %47 : vector<5x128xf32>
    %49 = arith.mulf %33, %33 : vector<64x128xf32>
    %cst_30 = arith.constant dense<0.000000e+00> : vector<64xf32>
    %50 = vector.multi_reduction <add>, %49, %cst_30 [1] : vector<64x128xf32> to vector<64xf32>
    %51 = vector.shape_cast %50 : vector<64xf32> to vector<64x1xf32>
    %cst_31 = arith.constant 1.000000e-24 : f32
    %52 = vector.broadcast %cst_31 : f32 to vector<64x1xf32>
    %53 = arith.maximumf %51, %52 : vector<64x1xf32>
    %54 = math.rsqrt %53 : vector<64x1xf32>
    %55 = vector.broadcast %54 : vector<64x1xf32> to vector<64x128xf32>
    %56 = arith.mulf %33, %55 : vector<64x128xf32>
    %cst_32 = arith.constant dense<0.000000e+00> : vector<5x64xf32>
    %57 = tpu.matmul %48, %56, %cst_32 {dimension_numbers = #tpu.dot_dimension_numbers<[1], [1], [0], [0], [0, 0, 1, 0], [], []>} : vector<5x128xf32>, vector<64x128xf32>, vector<5x64xf32> -> vector<5x64xf32>
    %cst_33 = arith.constant dense<0.000000e+00> : vector<5x1024xf32>
    %58 = tpu.matmul %57, %1, %cst_33 {dimension_numbers = #tpu.dot_dimension_numbers<[1], [0], [0], [1], [0, 0, 1, 1], [], []>} : vector<5x64xf32>, vector<64x1024xf32>, vector<5x1024xf32> -> vector<5x1024xf32>
    %c1_34 = arith.constant 1 : index
    %c0_35 = arith.constant 0 : index
    %c0_36 = arith.constant 0 : index
    %59 = vector.load %arg6[%c1_34, %c0_35, %c0_36] : memref<2x5x1024xf32, #tpu.memory_space<vmem>>, vector<1x5x1024xf32>
    %60 = vector.shape_cast %59 : vector<1x5x1024xf32> to vector<5x1024xf32>
    %61 = vector.shape_cast %58 : vector<5x1024xf32> to vector<1x5x1024xf32>
    tpu.vector_store %arg6[%c1_34, %c0_35, %c0_36], %61 {strides = array<i32>} : memref<2x5x1024xf32, #tpu.memory_space<vmem>>, vector<1x5x1024xf32>,
    return
  }
  func.func @transform_0(%arg0: i32) -> (i32, i32, i32) {
    %c0_i32 = arith.constant 0 : i32
    %c0_i32_0 = arith.constant 0 : i32
    %c0_i32_1 = arith.constant 0 : i32
    %c0_i32_2 = arith.constant 0 : i32
    return %c0_i32, %c0_i32_0, %c0_i32_1 : i32, i32, i32
  }
  func.func @transform_1(%arg0: i32) -> (i32, i32, i32) {
    %c0_i32 = arith.constant 0 : i32
    %c0_i32_0 = arith.constant 0 : i32
    %c0_i32_1 = arith.constant 0 : i32
    %c0_i32_2 = arith.constant 0 : i32
    return %c0_i32, %c0_i32_0, %c0_i32_1 : i32, i32, i32
  }
  func.func @transform_2(%arg0: i32) -> (i32, i32, i32) {
    %c0_i32 = arith.constant 0 : i32
    %c0_i32_0 = arith.constant 0 : i32
    %c0_i32_1 = arith.constant 0 : i32
    %c0_i32_2 = arith.constant 0 : i32
    return %c0_i32, %c0_i32_0, %c0_i32_1 : i32, i32, i32
  }
  func.func @transform_3(%arg0: i32) -> (i32, i32) {
    %c0_i32 = arith.constant 0 : i32
    %c0_i32_0 = arith.constant 0 : i32
    %c0_i32_1 = arith.constant 0 : i32
    return %c0_i32, %c0_i32_0 : i32, i32
  }
  func.func @transform_4(%arg0: i32) -> (i32, i32) {
    %c0_i32 = arith.constant 0 : i32
    %c0_i32_0 = arith.constant 0 : i32
    %c0_i32_1 = arith.constant 0 : i32
    return %c0_i32, %c0_i32_0 : i32, i32
  }
  func.func @transform_5(%arg0: i32) -> (i32, i32, i32) {
    %c0_i32 = arith.constant 0 : i32
    %c0_i32_0 = arith.constant 0 : i32
    %c0_i32_1 = arith.constant 0 : i32
    %c0_i32_2 = arith.constant 0 : i32
    return %c0_i32, %c0_i32_0, %c0_i32_1 : i32, i32, i32
  }
}

</mosaic_0001>

<bundles_post_ra>
// kernel: tpu_custom_call.1
= control target key start
LH: loop header
LB: loop body
LE: loop exit
PB: predicated region body
PF: predicated region fallthrough
CT: control target
= control target key end

     0   :  { %10 = vsyncpa [#allocation3], 0  ;;  %s1691_s0 = inlined_call_operand.hbm [shape: f32[2,64,128], index: 0, kind: input, shape index: {}]   ;;  %s1692_s1 = inlined_call_operand.vmem [shape: f32[2,5,128], index: 1, kind: input, shape index: {}]   ;;  %s1693_s2 = inlined_call_operand.vmem [shape: f32[2,5,128], index: 2, kind: input, shape index: {}]   ;;  %s1694_s3 = inlined_call_operand.vmem [shape: f32[1,128], index: 3, kind: input, shape index: {}]   ;;  %s1695_s4 = inlined_call_operand.hbm [shape: f32[64,1024], index: 4, kind: input, shape index: {}]   ;;  %s1696_s5 = inlined_call_operand.vmem [shape: f32[2,5,1024], index: 5, kind: output, shape index: {}]  }
   0x1   :  { %11 = vsyncpa [#allocation5], 0  ;;  %s1315_s18 = smov [#allocation2]   ;;  %s1267_s22 = scalar_lea.hbm %s1691_s0, 2048 }
   0x2   :  { %s17_s19 = sshll.u32 %s1315_s18, 4  ;;  %p1268_p0 = scmp.ne.s32.totalorder %s1691_s0, %s1267_s22  ;;  %s18_s19 = int_to_ptr.vmem [resolvable:$true] %s17_s19 }
   0x3   :  { %p1271_p1 = scmp.lt.u32.totalorder %s1267_s22, %s1691_s0 }
   0x5   :  { %p1273_p2 = pnand %p1271_p1, %p1268_p0 }
   0x7   :  { %1276 = shalt.err (!%p1273_p2)
}
   0x8   :  { %s1277_s27 = scalar_lea.vmem %s18_s19, 2048  ;;  %p1282_p4 = scmp.lt.s32.totalorder %s18_s19, %s18_s19 }
   0x9   :  { %p1278_p3 = scmp.ne.s32.totalorder %s18_s19, %s1277_s27  ;;  %p1283_p5 = scmp.lt.s32.totalorder %s1277_s27, %s1277_s27 }
   0xb   :  { %p1284_p6 = por %p1283_p5, %p1282_p4 }
   0xd   :  { %p1285_p7 = pnand %p1284_p6, %p1278_p3 }
   0xf   :  { %1288 = shalt.err (!%p1285_p7)
}
  0x10   :  { %s1316_s28 = smov 128   ;;  %s1317_s29 = smov 8  }
  0x11   :  { %23 = dma.hbm_to_vmem [thread:$0]  %s1691_s0, 2048, %s18_s19, [#allocation3], %s1316_s28, %s1316_s28, %s1317_s29  }
  0x12   :  { %s1318_s7 = smov [#allocation4]   ;;  %s1289_s11 = scalar_lea.hbm %s1695_s4, 8192 }
  0x13   :  { %s35_s8 = sshll.u32 %s1318_s7, 4  ;;  %p1290_p8 = scmp.ne.s32.totalorder %s1695_s4, %s1289_s11  ;;  %s36_s8 = int_to_ptr.vmem [resolvable:$true] %s35_s8 }
  0x14   :  { %p1293_p9 = scmp.lt.u32.totalorder %s1289_s11, %s1695_s4 }
  0x16   :  { %p1295_p10 = pnand %p1293_p9, %p1290_p8 }
  0x18   :  { %1298 = shalt.err (!%p1295_p10)
}
  0x19   :  { %s1299_s16 = scalar_lea.vmem %s36_s8, 8192  ;;  %p1304_p12 = scmp.lt.s32.totalorder %s36_s8, %s36_s8 }
  0x1a   :  { %p1300_p11 = scmp.ne.s32.totalorder %s36_s8, %s1299_s16  ;;  %p1305_p13 = scmp.lt.s32.totalorder %s1299_s16, %s1299_s16 }
  0x1c   :  { %p1306_p0 = por %p1305_p13, %p1304_p12 }
  0x1e   :  { %p1307_p1 = pnand %p1306_p0, %p1300_p11 }
  0x20   :  { %1310 = shalt.err (!%p1307_p1)
}
  0x21   :  { %s1319_s0 = smov 1024   ;;  %s1320_s17 = smov 64  }
  0x22   :  { %41 = dma.hbm_to_vmem [thread:$0]  %s1695_s4, 8192, %s36_s8, [#allocation5], %s1319_s0, %s1319_s0, %s1320_s17  }
  0x23   :  { %1311 = dma.done.wait [#allocation3], 2048  }
  0x24   :  { %1312 = vsyncadd [#allocation3], 4294965248 }
  0x25   :  { %1313 = dma.done.wait [#allocation5], 8192  }
  0x26   :  { %1314 = vsyncadd [#allocation5], 4294959104  ;;  %v1378_v0 = vld [vmem:[#allocation2] sm:$0xff]  ;;  %v1380_v1 = vld [vmem:[#allocation2 + $0x10] sm:$0xff]  ;;  %vm132_vm0 = vcmask 1044480   ;;  %v1321_v23 = vmov 0.0|0.0  }
  0x27   :  { %v1382_v2 = vld [vmem:[#allocation2 + $0x8] sm:$0xff]  ;;  %v139_v3 = vmul.f32 %v1378_v0, %v1378_v0  ;;  %v141_v4 = vmul.f32 %v1380_v1, %v1380_v1  ;;  %v1388_v5 = vld [vmem:[#allocation2 + $0x18] sm:$0xff]  ;;  %v995_v6 = vld [vmem:[%s1694_s3] ss:$0 sm:$0xff]  ;;  %1070 = vmatprep.subr.bf16.mxu0 %v1321_v23  ;;  %vm1322_vm1 = vmmov 0   ;;  %v1323_v24 = vmov 0.0  }
  0x28   :  { %v140_v7 = vmul.f32 %v1382_v2, %v1382_v2  ;;  %v142_v8 = vmul.f32 %v1388_v5, %v1388_v5  ;;  %v122_v9 = vld [vmem:[%s1693_s2] sm:$0x1f]  ;;  %v1400_v10 = vld [vmem:[#allocation2 + $0x28] sm:$0xff]  ;;  %v1411_v16 = vld [vmem:[#allocation2 + $0x38] sm:$0xff]  ;;  %1048 = vmatprep.mubr.msk.f32.mxu0 %vm1322_vm1, %v1323_v24  ;;  %325 = vmatprep.mubr.f32.mxu1 %v1323_v24  ;;  %vm257_vm2 = vcmask 523264  }
  0x29   :  { %147 = vadd.xlane.f32.xlu0 %v139_v3  ;;  %151 = vadd.xlane.f32.xlu1 %v141_v4  ;;  %v1402_v11 = vld [vmem:[#allocation2 + $0x20] sm:$0xff]  ;;  %v129_v12 = vmul.f32 %v995_v6, %v122_v9  ;;  %v144_v14 = vmul.f32 %v1400_v10, %v1400_v10  ;;  %v1413_v17 = vld [vmem:[#allocation2 + $0x30] sm:$0xff]  ;;  %v146_v19 = vmul.f32 %v1411_v16, %v1411_v16  ;;  %v1430_v26 = vld [vmem:[#allocation2 + $0x48] sm:$0xff] }
  0x2a   :  { %v121_v13 = vld [vmem:[%s1692_s1] sm:$0x1f]  ;;  %v143_v15 = vmul.f32 %v1402_v11, %v1402_v11  ;;  %v145_v20 = vmul.f32 %v1413_v17, %v1413_v17  ;;  %v1432_v27 = vld [vmem:[#allocation2 + $0x50] sm:$0xff]  ;;  %v576_v29 = vmul.f32 %v1430_v26, %v1430_v26  ;;  %v1438_v30 = vld [vmem:[#allocation2 + $0x58] sm:$0xff] }
  0x2b   :  { %v1415_v18 = vadd.f32 %v129_v12, %v121_v13  ;;  %v1428_v25 = vld [vmem:[#allocation2 + $0x40] sm:$0xff]  ;;  %v577_v31 = vmul.f32 %v1432_v27, %v1432_v27  ;;  %v578_v32 = vmul.f32 %v1438_v30, %v1438_v30  ;;  %v1001_v33 = vld [vmem:[%s1693_s2 + $0x8] sm:$0x1f]  ;;  %v1458_v40 = vld [vmem:[#allocation2 + $0x70] sm:$0xff] }
  0x2c   :  { %v575_v28 = vmul.f32 %v1428_v25, %v1428_v25  ;;  %v1447_v34 = vld [vmem:[#allocation2 + $0x60] sm:$0xff]  ;;  %v1449_v35 = vld [vmem:[#allocation2 + $0x68] sm:$0xff]  ;;  %v566_v36 = vmul.f32 %v1001_v33, %v995_v6  ;;  %v1460_v41 = vld [vmem:[#allocation2 + $0x78] sm:$0xff]  ;;  %v581_v43 = vmul.f32 %v1458_v40, %v1458_v40 }
  0x2d   :  { %149 = vadd.xlane.f32.xlu0 %v140_v7  ;;  %153 = vadd.xlane.f32.xlu1 %v142_v8  ;;  %v131_v21 = vmul.f32 %v1415_v18, %v1415_v18  ;;  %v1000_v37 = vld [vmem:[%s1692_s1 + $0x8] sm:$0x1f]  ;;  %v579_v38 = vmul.f32 %v1447_v34, %v1447_v34  ;;  %v580_v39 = vmul.f32 %v1449_v35, %v1449_v35  ;;  %v49_v50 = vld [vmem:[#allocation4] sm:$0xff] }
  0x2e   :  { %v1462_v42 = vadd.f32 %v1000_v37, %v566_v36  ;;  %v582_v44 = vmul.f32 %v1460_v41, %v1460_v41  ;;  %v50_v47 = vld [vmem:[#allocation4 + $0x8] sm:$0xff]  ;;  %v57_v51 = vld [vmem:[#allocation4 + $0x40] sm:$0xff] }
  0x2f   :  { %v133_v22 = vsel %vm132_vm0, %v131_v21, 0.0  ;;  %v58_v48 = vld [vmem:[#allocation4 + $0x48] sm:$0xff]  ;;  %v1473_v52 = vpack.c.bf16 %v57_v51, %v49_v50  ;;  %v65_v56 = vld [vmem:[#allocation4 + $0x80] sm:$0xff] }
  0x30   :  { %v568_v45 = vmul.f32 %v1462_v42, %v1462_v42  ;;  %v1471_v49 = vpack.c.bf16 %v58_v48, %v50_v47  ;;  %v66_v53 = vld [vmem:[#allocation4 + $0x88] sm:$0xff]  ;;  %v73_v57 = vld [vmem:[#allocation4 + $0xc0] sm:$0xff] }
  0x31   :  { %157 = vadd.xlane.f32.xlu1 %v144_v14  ;;  %155 = vadd.xlane.f32.xlu0 %v143_v15  ;;  %v74_v54 = vld [vmem:[#allocation4 + $0xc8] sm:$0xff]  ;;  %v1479_v58 = vpack.c.bf16 %v73_v57, %v65_v56  ;;  %v81_v62 = vld [vmem:[#allocation4 + $0x100] sm:$0xff] }
  0x32   :  { %v569_v46 = vsel %vm132_vm0, %v568_v45, 0.0  ;;  %1083 = vmatprep.subr.bf16.mxu1 %v1471_v49  ;;  %v1477_v55 = vpack.c.bf16 %v74_v54, %v66_v53  ;;  %v82_v59 = vld [vmem:[#allocation4 + $0x108] sm:$0xff]  ;;  %v89_v63 = vld [vmem:[#allocation4 + $0x140] sm:$0xff] }
  0x33   :  { %1085 = vmatpush1.bf16.msra.mxu1 %v1473_v52  ;;  %v90_v60 = vld [vmem:[#allocation4 + $0x148] sm:$0xff]  ;;  %v1485_v6 = vpack.c.bf16 %v89_v63, %v81_v62  ;;  %v97_v8 = vld [vmem:[#allocation4 + $0x180] sm:$0xff] }
  0x34   :  { %1087 = vmatprep.subr.bf16.mxu1 %v1477_v55  ;;  %v1482_v61 = vpack.c.bf16 %v90_v60, %v82_v59  ;;  %v98_v3 = vld [vmem:[#allocation4 + $0x188] sm:$0xff]  ;;  %v105_v9 = vld [vmem:[#allocation4 + $0x1c0] sm:$0xff] }
  0x35   :  { %161 = vadd.xlane.f32.xlu1 %v146_v19  ;;  %159 = vadd.xlane.f32.xlu0 %v145_v20  ;;  %v106_v4 = vld [vmem:[#allocation4 + $0x1c8] sm:$0xff]  ;;  %v1491_v12 = vpack.c.bf16 %v105_v9, %v97_v8 }
  0x36   :  { %v1488_v7 = vpack.c.bf16 %v106_v4, %v98_v3  ;;  %v54_v4 = vld [vmem:[#allocation4 + $0x28] sm:$0xff] }
  0x37   :  { %1089 = vmatpush1.bf16.msra.mxu1 %v1479_v58  ;;  %v62_v8 = vld [vmem:[#allocation4 + $0x68] sm:$0xff] }
  0x38   :  { %1091 = vmatprep.subr.bf16.mxu1 %v1482_v61 }
  0x39   :  { %134 = vadd.xlane.f32.xlu0 %v133_v22  ;;  %583 = vadd.xlane.f32.xlu1 %v575_v28 }
  0x3b   :  { %1093 = vmatpush1.bf16.msra.mxu1 %v1485_v6 }
  0x3c   :  { %1095 = vmatprep.subr.bf16.mxu1 %v1488_v7 }
  0x3d   :  { %585 = vadd.xlane.f32.xlu0 %v576_v29  ;;  %587 = vadd.xlane.f32.xlu1 %v577_v31 }
  0x3f   :  { %1097 = vmatpush1.bf16.msra.mxu1 %v1491_v12 }
  0x41   :  { %589 = vadd.xlane.f32.xlu0 %v578_v32  ;;  %591 = vadd.xlane.f32.xlu1 %v579_v38 }
  0x45   :  { %593 = vadd.xlane.f32.xlu0 %v580_v39  ;;  %595 = vadd.xlane.f32.xlu1 %v581_v43 }
  0x49   :  { %597 = vadd.xlane.f32.xlu0 %v582_v44  ;;  %570 = vadd.xlane.f32.xlu1 %v569_v46 }
  0xb6   :  { %v148_v13 = vpop.xlane.xlu0 %147  ;;  %v152_v14 = vpop.xlane.xlu1 %151 }
  0xb7   :  { %v163_v15 = vmax.f32 %v148_v13, 1e-24  ;;  %v165_v22 = vmax.f32 %v152_v14, 1e-24  ;;  %v53_v13 = vld [vmem:[#allocation4 + $0x20] sm:$0xff] }
  0xb8   :  { %v61_v14 = vld [vmem:[#allocation4 + $0x60] sm:$0xff] }
  0xb9   :  { %1231 = vrsqrt.f32 %v163_v15  ;;  %v70_v15 = vld [vmem:[#allocation4 + $0xa8] sm:$0xff] }
  0xba   :  { %v150_v19 = vpop.xlane.xlu0 %149  ;;  %v154_v20 = vpop.xlane.xlu1 %153 }
  0xbb   :  { %v164_v21 = vmax.f32 %v150_v19, 1e-24  ;;  %v166_v28 = vmax.f32 %v154_v20, 1e-24  ;;  %v78_v19 = vld [vmem:[#allocation4 + $0xe8] sm:$0xff] }
  0xbd   :  { %1233 = vrsqrt.f32 %v164_v21  ;;  %v69_v21 = vld [vmem:[#allocation4 + $0xa0] sm:$0xff] }
  0xbe   :  { %v158_v29 = vpop.xlane.xlu1 %157  ;;  %1235 = vrsqrt.f32 %v165_v22  ;;  %v156_v31 = vpop.xlane.xlu0 %155  ;;  %v77_v22 = vld [vmem:[#allocation4 + $0xe0] sm:$0xff] }
  0xbf   :  { %1237 = vrsqrt.f32 %v166_v28  ;;  %v168_v32 = vmax.f32 %v158_v29, 1e-24  ;;  %v167_v33 = vmax.f32 %v156_v31, 1e-24  ;;  %v86_v28 = vld [vmem:[#allocation4 + $0x128] sm:$0xff]  ;;  %v1515_v31 = vpack.c.bf16 %v77_v22, %v69_v21 }
  0xc0   :  { %v94_v29 = vld [vmem:[#allocation4 + $0x168] sm:$0xff] }
  0xc1   :  { %1239 = vrsqrt.f32 %v168_v32  ;;  %v1519_v32 = vpack.c.bf16 %v94_v29, %v86_v28  ;;  %v67_v29 = vld [vmem:[#allocation4 + $0x90] sm:$0xff] }
  0xc2   :  { %1241 = vrsqrt.f32 %v167_v33  ;;  %v162_v38 = vpop.xlane.xlu1 %161  ;;  %v160_v44 = vpop.xlane.xlu0 %159  ;;  %v93_v33 = vld [vmem:[#allocation4 + $0x160] sm:$0xff] }
  0xc3   :  { %v1232_v36 = vpop.eup %1231  ;;  %v170_v47 = vmax.f32 %v162_v38, 1e-24  ;;  %v169_v50 = vmax.f32 %v160_v44, 1e-24  ;;  %v109_v44 = vld [vmem:[#allocation4 + $0x1e0] sm:$0xff] }
  0xc4   :  { %v179_v39 = vmul.f32 %v1232_v36, %v1378_v0  ;;  %v102_v36 = vld [vmem:[#allocation4 + $0x1a8] sm:$0xff] }
  0xc5   :  { %1243 = vrsqrt.f32 %v170_v47  ;;  %v60_v47 = vld [vmem:[#allocation4 + $0x58] sm:$0xff] }
  0xc6   :  { %1245 = vrsqrt.f32 %v169_v50  ;;  %v135_v57 = vpop.xlane.xlu0 %134  ;;  %v584_v50 = vpop.xlane.xlu1 %583 }
  0xc7   :  { %v1234_v37 = vpop.eup %1233  ;;  %v136_v60 = vmax.f32 %v135_v57, 1e-24 }
  0xc8   :  { %v180_v43 = vmul.f32 %v1234_v37, %v1382_v2  ;;  %v1236_v45 = vpop.eup %1235  ;;  %v110_v37 = vld [vmem:[#allocation4 + $0x1e8] sm:$0xff] }
  0xc9   :  { %v1238_v48 = vpop.eup %1237  ;;  %v181_v51 = vmul.f32 %v1236_v45, %v1380_v1  ;;  %1247 = vrsqrt.f32 %v136_v60 }
  0xca   :  { %v1071_v46 = vpack.c.bf16 %v180_v43, %v179_v39  ;;  %v182_v53 = vmul.f32 %v1238_v48, %v1388_v5  ;;  %v1525_v39 = vpack.c.bf16 %v110_v37, %v102_v36  ;;  %v101_v43 = vld [vmem:[#allocation4 + $0x1a0] sm:$0xff]  ;;  %v92_v36 = vld [vmem:[#allocation4 + $0x158] sm:$0xff] }
  0xcb   :  { %v1240_v54 = vpop.eup %1239  ;;  %v1528_v45 = vpack.c.bf16 %v109_v44, %v101_v43 }
  0xcc   :  { %1072 = vmatpush3.bf16.xpose.msra.mxu0 %v1071_v46  ;;  %v1242_v56 = vpop.eup %1241  ;;  %v1074_v0 = vpack.c.bf16 %v182_v53, %v181_v51  ;;  %v184_v59 = vmul.f32 %v1240_v54, %v1400_v10  ;;  %v52_v46 = vld [vmem:[#allocation4 + $0x18] sm:$0xff]  ;;  %v586_v51 = vpop.xlane.xlu0 %585  ;;  %v599_v53 = vmax.f32 %v584_v50, 1e-24 }
  0xcd   :  { %1073 = vmatprep.subr.bf16.mxu0 %v1321_v23  ;;  %v183_v2 = vmul.f32 %v1242_v56, %v1402_v11  ;;  %v1506_v11 = vpack.c.bf16 %v62_v8, %v54_v4  ;;  %v1533_v48 = vpack.c.bf16 %v60_v47, %v52_v46  ;;  %v600_v54 = vmax.f32 %v586_v51, 1e-24  ;;  %v588_v56 = vpop.xlane.xlu1 %587  ;;  %v51_v8 = vld [vmem:[#allocation4 + $0x10] sm:$0xff] }
  0xce   :  { %1249 = vrsqrt.f32 %v599_v53  ;;  %v601_v57 = vmax.f32 %v588_v56, 1e-24  ;;  %v83_v51 = vld [vmem:[#allocation4 + $0x110] sm:$0xff]  ;;  %v108_v56 = vld [vmem:[#allocation4 + $0x1d8] sm:$0xff] }
  0xcf   :  { %v1244_v62 = vpop.eup %1243  ;;  %v1077_v63 = vpack.c.bf16 %v184_v59, %v183_v2  ;;  %1099 = vmatprep.subr.bf16.mxu1 %v1533_v48  ;;  %1251 = vrsqrt.f32 %v600_v54  ;;  %v91_v53 = vld [vmem:[#allocation4 + $0x150] sm:$0xff]  ;;  %v100_v54 = vld [vmem:[#allocation4 + $0x198] sm:$0xff] }
  0xd0   :  { %v1246_v3 = vpop.eup %1245  ;;  %v186_v5 = vmul.f32 %v1244_v62, %v1411_v16  ;;  %v1512_v16 = vpack.c.bf16 %v78_v19, %v70_v15  ;;  %1253 = vrsqrt.f32 %v601_v57 }
  0xd1   :  { %v185_v1 = vmul.f32 %v1246_v3, %v1413_v17  ;;  %v1510_v17 = vpack.c.bf16 %v61_v14, %v53_v13  ;;  %v592_v59 = vpop.xlane.xlu1 %591  ;;  %v76_v13 = vld [vmem:[#allocation4 + $0xd8] sm:$0xff] }
  0xd2   :  { %v603_v3 = vmax.f32 %v592_v59, 1e-24  ;;  %v99_v59 = vld [vmem:[#allocation4 + $0x190] sm:$0xff] }
  0xd3   :  { %v1080_v9 = vpack.c.bf16 %v186_v5, %v185_v1  ;;  %v1248_v10 = vpop.eup %1247 }
  0xd4   :  { %1075 = vmatpush3.bf16.xpose.msra.mxu0 %v1074_v0  ;;  %v138_v20 = vmul.f32 %v1248_v10, %v1415_v18  ;;  %v85_v18 = vld [vmem:[#allocation4 + $0x120] sm:$0xff]  ;;  %v590_v0 = vpop.xlane.xlu0 %589  ;;  %v68_v10 = vld [vmem:[#allocation4 + $0x98] sm:$0xff] }
  0xd5   :  { %1076 = vmatprep.subr.bf16.mxu0 %v1321_v23  ;;  %v1522_v38 = vpack.c.bf16 %v93_v33, %v85_v18  ;;  %v602_v2 = vmax.f32 %v590_v0, 1e-24  ;;  %v596_v14 = vpop.xlane.xlu1 %595  ;;  %v1540_v28 = vpack.c.bf16 %v76_v13, %v68_v10  ;;  %v84_v33 = vld [vmem:[#allocation4 + $0x118] sm:$0xff]  ;;  %v63_v10 = vld [vmem:[#allocation4 + $0x70] sm:$0xff] }
  0xd6   :  { %v1554_v50 = vpack.c.bf16 %v92_v36, %v84_v33  ;;  %v96_v33 = vld [vmem:[#allocation4 + $0x178] sm:$0xff] }
  0xd7   :  { %1255 = vrsqrt.f32 %v602_v2  ;;  %v1564_v2 = vpack.c.bf16 %v108_v56, %v100_v54  ;;  %v112_v54 = vld [vmem:[#allocation4 + $0x1f8] sm:$0xff] }
  0xd8   :  { %v1250_v60 = vpop.eup %1249  ;;  %v594_v62 = vpop.xlane.xlu0 %593  ;;  %1257 = vrsqrt.f32 %v603_v3 }
  0xd9   :  { %v604_v1 = vmax.f32 %v594_v62, 1e-24  ;;  %v615_v5 = vmul.f32 %v1250_v60, %v1428_v25  ;;  %v75_v25 = vld [vmem:[#allocation4 + $0xd0] sm:$0xff]  ;;  %v56_v62 = vld [vmem:[#allocation4 + $0x38] sm:$0xff]  ;;  %v571_v3 = vpop.xlane.xlu1 %570 }
  0xda   :  { %v1549_v44 = vpack.c.bf16 %v75_v25, %v67_v29  ;;  %v107_v60 = vld [vmem:[#allocation4 + $0x1d0] sm:$0xff]  ;;  %v572_v13 = vmax.f32 %v571_v3, 1e-24 }
  0xdb   :  { %1259 = vrsqrt.f32 %v604_v1  ;;  %v1567_v1 = vpack.c.bf16 %v107_v60, %v99_v59  ;;  %v71_v29 = vld [vmem:[#allocation4 + $0xb0] sm:$0xff] }
  0xdc   :  { %1078 = vmatpush3.bf16.xpose.msra.mxu0 %v1077_v63  ;;  %v1252_v63 = vpop.eup %1251  ;;  %v598_v21 = vpop.xlane.xlu0 %597  ;;  %v79_v25 = vld [vmem:[#allocation4 + $0xf0] sm:$0xff] }
  0xdd   :  { %1079 = vmatprep.subr.bf16.mxu0 %v1321_v23  ;;  %v616_v4 = vmul.f32 %v1252_v63, %v1430_v26  ;;  %v1254_v15 = vpop.eup %1253  ;;  %v605_v26 = vmax.f32 %v596_v14, 1e-24  ;;  %v606_v43 = vmax.f32 %v598_v21, 1e-24  ;;  %v64_v63 = vld [vmem:[#allocation4 + $0x78] sm:$0xff]  ;;  %v1584_v36 = vpack.c.bf16 %v79_v25, %v71_v29 }
  0xde   :  { %v617_v46 = vmul.f32 %v1254_v15, %v1432_v27  ;;  %v72_v14 = vld [vmem:[#allocation4 + $0xb8] sm:$0xff] }
  0xdf   :  { %1261 = vrsqrt.f32 %v605_v26  ;;  %v80_v15 = vld [vmem:[#allocation4 + $0xf8] sm:$0xff] }
  0xe0   :  { %1263 = vrsqrt.f32 %v606_v43  ;;  %v88_v26 = vld [vmem:[#allocation4 + $0x138] sm:$0xff] }
  0xe1   :  { %v1256_v22 = vpop.eup %1255  ;;  %1265 = vrsqrt.f32 %v572_v13 }
  0xe2   :  { %v618_v47 = vmul.f32 %v1256_v22, %v1438_v30  ;;  %v1258_v27 = vpop.eup %1257  ;;  %v1561_v30 = vpack.c.bf16 %v91_v53, %v83_v51  ;;  %v95_v51 = vld [vmem:[#allocation4 + $0x170] sm:$0xff]  ;;  %v104_v53 = vld [vmem:[#allocation4 + $0x1b8] sm:$0xff] }
  0xe4   :  { %1081 = vmatpush3.bf16.xpose.msra.mxu0 %v1080_v9  ;;  %v59_v9 = vld [vmem:[#allocation4 + $0x50] sm:$0xff]  ;;  %v1150_v0 = vpack.c.bf16 %v618_v47, %v617_v46  ;;  %v1589_v46 = vpack.c.bf16 %v96_v33, %v88_v26 }
  0xe5   :  { %1115 = vmatprep.subr.bf16.mxu0 %v1506_v11  ;;  %v1538_v19 = vpack.c.bf16 %v59_v9, %v51_v8  ;;  %v1260_v57 = vpop.eup %1259  ;;  %v1572_v8 = vpack.c.bf16 %v64_v63, %v56_v62  ;;  %v55_v9 = vld [vmem:[#allocation4 + $0x30] sm:$0xff] }
  0xe6   :  { %v1576_v21 = vpack.c.bf16 %v63_v10, %v55_v9  ;;  %v87_v47 = vld [vmem:[#allocation4 + $0x130] sm:$0xff] }
  0xe7   :  { %v1594_v56 = vpack.c.bf16 %v95_v51, %v87_v47 }
  0xeb   :  { %1049 = vmatmul.mubr.f32.vlgmr.msra.gmra.mrb[0].mxu0 %v138_v20  ;;  %v1147_v20 = vpack.c.bf16 %v616_v4, %v615_v5  ;;  %v619_v5 = vmul.f32 %v1258_v27, %v1447_v34  ;;  %v620_v4 = vmul.f32 %v1260_v57, %v1449_v35  ;;  %v1579_v35 = vpack.c.bf16 %v80_v15, %v72_v14 }
  0xec   :  { %1117 = vmatpush1.bf16.msra.mxu0 %v1510_v17  ;;  %467 = vmatprep.mubr.f32.mxu0 %v1323_v24 }
  0xed   :  { %1119 = vmatprep.subr.bf16.mxu0 %v1512_v16  ;;  %v1153_v22 = vpack.c.bf16 %v620_v4, %v619_v5 }
  0xf0   :  { %1121 = vmatpush1.bf16.msra.mxu0 %v1515_v31 }
  0xf1   :  { %1123 = vmatprep.subr.bf16.mxu0 %v1519_v32 }
  0xf4   :  { %1125 = vmatpush1.bf16.msra.mxu0 %v1522_v38 }
  0xf5   :  { %1127 = vmatprep.subr.bf16.mxu0 %v1525_v39 }
  0xf8   :  { %1129 = vmatpush1.bf16.msra.mxu0 %v1528_v45 }
  0xf9   :  { %1146 = vmatprep.subr.bf16.mxu0 %v1321_v23 }
 0x1be   :  { %v1542_v18 = vpop.f32.mrb[0].mxu0 }
 0x1bf   :  { %v1050_v37 = vpop.f32.mrb[1].mxu0  ;;  %996 = vmatmul.mubr.msk.f32.vlgmr.msra.gmra.mrb[0].mxu1 %vm257_vm2, %v1542_v18  ;;  %998 = vmatmul.mubr.msk.f32.vlgmr.msra.gmra.mrb[2].mxu0 %vm257_vm2, %v1542_v18 }
 0x1c0   :  { %1101 = vmatpush1.bf16.msra.mxu1 %v1538_v19  ;;  %1148 = vmatpush3.bf16.xpose.msra.mxu0 %v1147_v20  ;;  %v1262_v20 = vpop.eup %1261 }
 0x1c1   :  { %1103 = vmatprep.subr.bf16.mxu1 %v1540_v28  ;;  %1149 = vmatprep.subr.bf16.mxu0 %v1321_v23  ;;  %v1264_v34 = vpop.eup %1263  ;;  %v621_v37 = vmul.f32 %v1262_v20, %v1458_v40  ;;  %v1597_v40 = vpack.c.bf16 %v112_v54, %v104_v53 }
 0x1c2   :  { %396 = vmatprep.mubr.f32.mxu1 %v1323_v24  ;;  %1067 = vmatprep.mubr.msk.f32.mxu0 %vm1322_vm1, %v1323_v24  ;;  %v622_v43 = vmul.f32 %v1264_v34, %v1460_v41  ;;  %v103_v41 = vld [vmem:[#allocation4 + $0x1b0] sm:$0xff]  ;;  %v1266_v57 = vpop.eup %1265 }
 0x1c3   :  { %v574_v59 = vmul.f32 %v1266_v57, %v1462_v42 }
 0x1c4   :  { %1105 = vmatpush1.bf16.msra.mxu1 %v1549_v44  ;;  %v1156_v27 = vpack.c.bf16 %v622_v43, %v621_v37 }
 0x1c5   :  { %1107 = vmatprep.subr.bf16.mxu1 %v1554_v50 }
 0x1c8   :  { %1109 = vmatpush1.bf16.msra.mxu1 %v1561_v30  ;;  %1151 = vmatpush3.bf16.xpose.msra.mxu0 %v1150_v0  ;;  %v111_v0 = vld [vmem:[#allocation4 + $0x1f0] sm:$0xff] }
 0x1c9   :  { %1111 = vmatprep.subr.bf16.mxu1 %v1564_v2  ;;  %1152 = vmatprep.subr.bf16.mxu0 %v1321_v23 }
 0x1cc   :  { %1113 = vmatpush1.bf16.msra.mxu1 %v1567_v1 }
 0x1cd   :  { %1131 = vmatprep.subr.bf16.mxu1 %v1572_v8 }
 0x1cf   :  { %997 = vmatmul.mubr.msk.f32.vlgmr.msra.gmra.mrb[2].mxu1 %vm257_vm2, %v1542_v18 }
 0x1d0   :  { %1133 = vmatpush1.bf16.msra.mxu1 %v1576_v21  ;;  %1154 = vmatpush3.bf16.xpose.msra.mxu0 %v1153_v22 }
 0x1d1   :  { %1135 = vmatprep.subr.bf16.mxu1 %v1579_v35  ;;  %1155 = vmatprep.subr.bf16.mxu0 %v1321_v23  ;;  %v1144_v23 = vpack.c.bf16 %v111_v0, %v103_v41 }
 0x1d2   :  { %538 = vmatprep.mubr.f32.mxu1 %v1323_v24 }
 0x1d4   :  { %1137 = vmatpush1.bf16.msra.mxu1 %v1584_v36 }
 0x1d5   :  { %1139 = vmatprep.subr.bf16.mxu1 %v1589_v46 }
 0x1d8   :  { %1141 = vmatpush1.bf16.msra.mxu1 %v1594_v56  ;;  %1157 = vmatpush3.bf16.xpose.msra.mxu0 %v1156_v27 }
 0x1d9   :  { %1143 = vmatprep.subr.bf16.mxu1 %v1597_v40  ;;  %1191 = vmatprep.subr.bf16.mxu0 %v1506_v11 }
 0x1dc   :  { %1145 = vmatpush1.bf16.msra.mxu1 %v1144_v23 }
 0x1dd   :  { %1159 = vmatprep.subr.bf16.mxu1 %v1471_v49 }
 0x1df   :  { %999 = vmatmul.mubr.msk.f32.vlgmr.msra.gmra.mrb[4].mxu1 %vm257_vm2, %v1542_v18  ;;  %1068 = vmatmul.mubr.f32.vlgmr.msra.gmra.mrb[4].mxu0 %v574_v59 }
 0x1e0   :  { %1161 = vmatpush1.bf16.msra.mxu1 %v1473_v52  ;;  %1193 = vmatpush1.bf16.msra.mxu0 %v1510_v17 }
 0x1e1   :  { %1163 = vmatprep.subr.bf16.mxu1 %v1477_v55  ;;  %1195 = vmatprep.subr.bf16.mxu0 %v1512_v16 }
 0x1e2   :  { %760 = vmatprep.mubr.f32.mxu1 %v1323_v24  ;;  %902 = vmatprep.mubr.f32.mxu0 %v1323_v24 }
 0x1e4   :  { %1165 = vmatpush1.bf16.msra.mxu1 %v1479_v58  ;;  %1197 = vmatpush1.bf16.msra.mxu0 %v1515_v31 }
 0x1e5   :  { %1167 = vmatprep.subr.bf16.mxu1 %v1482_v61  ;;  %1199 = vmatprep.subr.bf16.mxu0 %v1519_v32 }
 0x1e8   :  { %1169 = vmatpush1.bf16.msra.mxu1 %v1485_v6  ;;  %1201 = vmatpush1.bf16.msra.mxu0 %v1522_v38 }
 0x1e9   :  { %1171 = vmatprep.subr.bf16.mxu1 %v1488_v7  ;;  %1203 = vmatprep.subr.bf16.mxu0 %v1525_v39 }
 0x1ec   :  { %1173 = vmatpush1.bf16.msra.mxu1 %v1491_v12  ;;  %1205 = vmatpush1.bf16.msra.mxu0 %v1528_v45 }
 0x1ed   :  { %1175 = vmatprep.subr.bf16.mxu1 %v1533_v48 }
 0x292   :  { %v327_v42 = vpop.f32.mrb[0].mxu1  ;;  %v469_v49 = vpop.f32.mrb[2].mxu0 }
 0x293   :  { %545 = vst [vmem:[%s1696_s5] sm:$0x1f] %v327_v42  ;;  %549 = vst [vmem:[%s1696_s5 + $0x20] sm:$0x1f] %v469_v49  ;;  %v329_v52 = vpop.f32.mrb[1].mxu1  ;;  %v471_v55 = vpop.f32.mrb[3].mxu0 }
 0x294   :  { %546 = vst [vmem:[%s1696_s5 + $0x8] sm:$0x1f] %v329_v52  ;;  %550 = vst [vmem:[%s1696_s5 + $0x28] sm:$0x1f] %v471_v55 }
 0x2a2   :  { %v398_v58 = vpop.f32.mrb[2].mxu1 }
 0x2a3   :  { %547 = vst [vmem:[%s1696_s5 + $0x10] sm:$0x1f] %v398_v58  ;;  %v400_v61 = vpop.f32.mrb[3].mxu1 }
 0x2a4   :  { %548 = vst [vmem:[%s1696_s5 + $0x18] sm:$0x1f] %v400_v61 }
 0x2b2   :  { %v540_v6 = vpop.f32.mrb[4].mxu1  ;;  %v689_v7 = vpop.f32.mrb[4].mxu0 }
 0x2b3   :  { %551 = vst [vmem:[%s1696_s5 + $0x30] sm:$0x1f] %v540_v6  ;;  %v542_v12 = vpop.f32.mrb[5].mxu1  ;;  %v1069_v11 = vpop.f32.mrb[5].mxu0  ;;  %1002 = vmatmul.mubr.msk.f32.vlgmr.msra.gmra.mrb[6].mxu1 %vm257_vm2, %v689_v7  ;;  %1004 = vmatmul.mubr.msk.f32.vlgmr.msra.gmra.mrb[6].mxu0 %vm257_vm2, %v689_v7 }
 0x2b4   :  { %552 = vst [vmem:[%s1696_s5 + $0x38] sm:$0x1f] %v542_v12  ;;  %1177 = vmatpush1.bf16.msra.mxu1 %v1538_v19  ;;  %831 = vmatprep.mubr.f32.mxu1 %v1323_v24 }
 0x2b5   :  { %1179 = vmatprep.subr.bf16.mxu1 %v1540_v28 }
 0x2b8   :  { %1181 = vmatpush1.bf16.msra.mxu1 %v1549_v44 }
 0x2b9   :  { %1183 = vmatprep.subr.bf16.mxu1 %v1554_v50 }
 0x2bc   :  { %1185 = vmatpush1.bf16.msra.mxu1 %v1561_v30 }
 0x2bd   :  { %1187 = vmatprep.subr.bf16.mxu1 %v1564_v2 }
 0x2c0   :  { %1189 = vmatpush1.bf16.msra.mxu1 %v1567_v1 }
 0x2c1   :  { %1207 = vmatprep.subr.bf16.mxu1 %v1572_v8 }
 0x2c3   :  { %1003 = vmatmul.mubr.msk.f32.vlgmr.msra.gmra.mrb[8].mxu1 %vm257_vm2, %v689_v7 }
 0x2c4   :  { %1209 = vmatpush1.bf16.msra.mxu1 %v1576_v21  ;;  %973 = vmatprep.mubr.f32.mxu1 %v1323_v24 }
 0x2c5   :  { %1211 = vmatprep.subr.bf16.mxu1 %v1579_v35 }
 0x2c8   :  { %1213 = vmatpush1.bf16.msra.mxu1 %v1584_v36 }
 0x2c9   :  { %1215 = vmatprep.subr.bf16.mxu1 %v1589_v46 }
 0x2cc   :  { %1217 = vmatpush1.bf16.msra.mxu1 %v1594_v56 }
 0x2cd   :  { %1219 = vmatprep.subr.bf16.mxu1 %v1597_v40 }
 0x2d0   :  { %1221 = vmatpush1.bf16.msra.mxu1 %v1144_v23 }
 0x2d3   :  { %1005 = vmatmul.mubr.msk.f32.vlgmr.msra.gmra.mrb[10].mxu1 %vm257_vm2, %v689_v7 }
 0x386   :  { %v762_v17 = vpop.f32.mrb[6].mxu1  ;;  %v904_v16 = vpop.f32.mrb[6].mxu0 }
 0x387   :  { %1006 = vst [vmem:[%s1696_s5 + $0x40] sm:$0x1f] %v762_v17  ;;  %1010 = vst [vmem:[%s1696_s5 + $0x60] sm:$0x1f] %v904_v16  ;;  %v764_v24 = vpop.f32.mrb[7].mxu1  ;;  %v906_v31 = vpop.f32.mrb[7].mxu0 }
 0x388   :  { %1007 = vst [vmem:[%s1696_s5 + $0x48] sm:$0x1f] %v764_v24  ;;  %1011 = vst [vmem:[%s1696_s5 + $0x68] sm:$0x1f] %v906_v31 }
 0x396   :  { %v833_v32 = vpop.f32.mrb[8].mxu1 }
 0x397   :  { %1008 = vst [vmem:[%s1696_s5 + $0x50] sm:$0x1f] %v833_v32  ;;  %v835_v38 = vpop.f32.mrb[9].mxu1 }
 0x398   :  { %1009 = vst [vmem:[%s1696_s5 + $0x58] sm:$0x1f] %v835_v38 }
 0x3a6   :  { %v975_v39 = vpop.f32.mrb[10].mxu1 }
 0x3a7   :  { %1012 = vst [vmem:[%s1696_s5 + $0x70] sm:$0x1f] %v975_v39  ;;  %v977_v45 = vpop.f32.mrb[11].mxu1 }
 0x3a8   :  { %1013 = vst [vmem:[%s1696_s5 + $0x78] sm:$0x1f] %v977_v45 }
 0x3a9   :  { %993 = vsyncpa [#allocation3], 1 }
 0x3aa   :  { %994 = vsyncpa [#allocation5], 1 }

</bundles_post_ra>
